<compile_context>
chip_gen: v7x
topology: tpu7x:2x2x1
jax: 0.10.0
libtpu: 0.0.40
codegen_flags: <defaults>
</compile_context>

<pallas_src>
import jax
import jax.numpy as jnp
from jax import lax
from jax.experimental import pallas as pl
from jax.experimental.pallas import tpu as pltpu

_MIB = 1024 * 1024
_KRON_BUDGET_BYTES = 8 * _MIB       # max bytes for the fused Kronecker matrix


# ----------------------------------------------------------------------------
# Generation-aware budgets (v5e/v6e: 128 MiB VMEM; v7x: 64 MiB).
# ----------------------------------------------------------------------------
def _hw_budgets():
    try:
        cap = int(pltpu.get_tpu_info().vmem_capacity_bytes)
    except Exception:
        cap = 64 * _MIB                          # conservative (v7x-sized)
    if cap >= 120 * _MIB:                        # v5e / v6e
        vmem_limit = 96 * _MIB
    else:                                        # v7x or unknown
        vmem_limit = min(48 * _MIB, (3 * cap) // 4)
    fused_budget = (3 * vmem_limit) // 4         # whole per-group working set
    tile_budget = vmem_limit // 3                # one row tile of the tiled path
    return vmem_limit, fused_budget, tile_budget


# Conservative per-grid-step working-set estimates (double-buffered in/out
# blocks + f32 in-kernel temporaries + 1 MiB headroom for weights/misc).
def _bytes_a1(nb, C, HW, hw, itemsize, mat_isz):
    io = 2 * nb * C * HW * itemsize              # shallower in
    io += 2 * nb * C * hw * itemsize             # deeper in
    io += 2 * nb * C * HW * itemsize             # out
    io += 2 * hw * HW * mat_isz                  # Kronecker matrix
    tmp = 2 * nb * C * HW * 4                    # f32 cast of sh + f32 upsample
    return io + tmp + _MIB


def _bytes_a2(C, H, W, hd, wd, itemsize, mat_isz):
    HW = H * W
    io = 4 * C * HW * itemsize + 2 * C * hd * wd * itemsize
    io += 2 * (H * hd + wd * W) * mat_isz
    tmp = 2 * C * HW * 4                         # f32 sh cast + f32 result
    tmp += C * H * hd * mat_isz                  # broadcast wh
    tmp += C * H * wd * 4                        # height-pass intermediate
    return io + tmp + _MIB


def _bytes_b_tile(tH, C, W, hd, wd, itemsize, mat_isz):
    io = 4 * C * tH * W * itemsize + 2 * C * hd * wd * itemsize
    io += 2 * (tH * hd + wd * W) * mat_isz
    tmp = 2 * C * tH * W * 4
    tmp += C * tH * hd * mat_isz
    tmp += C * tH * wd * 4
    return io + tmp + _MIB


def _pick_tile_h(H, C, W, hd, wd, itemsize, mat_isz, budget, max_tile_h=None):
    """Row-tile height: multiple of 8 (or full H) under the VMEM budget; prefers
    exact divisors of H (zero waste), falls back to a ragged last tile."""
    hi = H if max_tile_h is None else min(H, max_tile_h)
    if hi <= 8:
        return max(hi, 1)
    cands = set(range(8, hi + 1, 8))
    if H <= hi:
        cands.add(H)
    fits = [t for t in cands
            if _bytes_b_tile(t, C, W, hd, wd, itemsize, mat_isz) <= budget]
    if not fits:
        return 8
    def waste(t):
        return pl.cdiv(H, t) * t - H
    fits.sort(key=lambda t: (waste(t), -t))
    return fits[0]


# ----------------------------------------------------------------------------
# Interpolation matrices (PyTorch bilinear, align_corners=False).
# ----------------------------------------------------------------------------
def _interp_matrix(out_size, in_size, dtype=jnp.float32):
    """M (out, in) with M @ x == F.interpolate along one axis (align_corners=False)."""
    if out_size == in_size:
        return jnp.eye(out_size, dtype=dtype)
    scale = in_size / out_size
    i = jnp.arange(out_size, dtype=jnp.float32)
    src = jnp.maximum((i + 0.5) * scale - 0.5, 0.0)
    idx0 = jnp.minimum(jnp.floor(src).astype(jnp.int32), in_size - 1)
    lam = src - idx0.astype(jnp.float32)
    idx1 = jnp.minimum(idx0 + 1, in_size - 1)
    rows = jnp.arange(out_size)
    m = jnp.zeros((out_size, in_size), dtype=jnp.float32)
    m = m.at[rows, idx0].add(1.0 - lam)
    m = m.at[rows, idx1].add(lam)
    return m.astype(dtype)


# ----------------------------------------------------------------------------
# Shared math helpers (row-form gate MLP, separable upsample).
# ----------------------------------------------------------------------------
def _gate_rows(sh_pool, dp_pool, w1aT, w1bT, b1, w2T, b2):
    """conv1x1 -> relu -> conv1x1 -> sigmoid on pooled (M, C) rows, f32."""
    h1 = (jnp.dot(sh_pool, w1aT, preferred_element_type=jnp.float32)
          + jnp.dot(dp_pool, w1bT, preferred_element_type=jnp.float32) + b1)
    h1 = jnp.maximum(h1, 0.0)
    return jax.nn.sigmoid(jnp.dot(h1, w2T, preferred_element_type=jnp.float32) + b2)


def _upsample_sep(dp, wh_tile, wwT, C, tH, hd, wd, W, mat_dtype):
    """Separable bilinear upsample of dp (C, hd, wd) to (C, tH, W), f32 result.

    Height pass first (only this tile's rows), then one folded width-pass
    matmul with M = C*tH (review item #1/#2).
    """
    if hd == 1 and wd == 1:
        # deepest / 1x1 case: bilinear upsample of a 1x1 map replicates it.
        return jnp.broadcast_to(dp.astype(jnp.float32), (C, tH, W))
    wh_b = jnp.broadcast_to(wh_tile[None], (C, tH, hd))
    up_h = lax.dot_general(
        wh_b, dp,
        dimension_numbers=(((2,), (1,)), ((0,), (0,))),
        preferred_element_type=jnp.float32)            # (C, tH, wd) f32
    up = jnp.dot(up_h.astype(mat_dtype).reshape(C * tH, wd), wwT,
                 preferred_element_type=jnp.float32)   # (C*tH, W) f32
    return up.reshape(C, tH, W)


# ----------------------------------------------------------------------------
# Path A1: small maps -> fully fused, lane-dense (C, H*W) layout, Kronecker
# upsample, nb batch elements folded per grid step.
# ----------------------------------------------------------------------------
def _cab_fused_kron(deeper, shallower, wrow, wh, ww, nb, mat_dtype, vmem_limit):
    N, C, H, W = shallower.shape
    hd, wd = deeper.shape[-2:]
    HW, hw = H * W, hd * wd
    out_dtype = shallower.dtype
    w1aT, w1bT, b1r, w2T, b2r = wrow

    sh_flat = shallower.reshape(N, C, HW)              # free HBM views
    dp_flat = deeper.reshape(N, C, hw)
    # Fused separable matrix: kb[(y,x),(Y,X)] = wh[Y,y] * ww[X,x]
    kb = jnp.einsum("Hh,Ww->hwHW", wh, ww).reshape(hw, HW).astype(mat_dtype)

    inv_sh = 1.0 / float(HW)
    inv_dp = 1.0 / float(hw)
    G = pl.cdiv(N, nb)

    def kernel(sh_ref, dp_ref, w1aT_ref, w1bT_ref, b1_ref, w2T_ref, b2_ref,
               kb_ref, out_ref):
        sh = sh_ref[...]                               # (nb, C, HW) native dtype
        dp = dp_ref[...]                               # (nb, C, hw)
        sh_pool = jnp.sum(sh.astype(jnp.float32), axis=2) * inv_sh   # (nb, C)
        dp_pool = jnp.sum(dp.astype(jnp.float32), axis=2) * inv_dp
        gate = _gate_rows(sh_pool, dp_pool, w1aT_ref[...], w1bT_ref[...],
                          b1_ref[...], w2T_ref[...], b2_ref[...])     # (nb, C)
        if hw == 1:
            up = jnp.broadcast_to(dp.astype(jnp.float32), (nb, C, HW))
        else:
            up = jnp.dot(dp.reshape(nb * C, hw), kb_ref[...],
                         preferred_element_type=jnp.float32).reshape(nb, C, HW)
        out_ref[...] = (sh.astype(jnp.float32) * gate[:, :, None]
                        + up).astype(out_ref.dtype)

    out_flat = pl.pallas_call(
        kernel,
        out_shape=jax.ShapeDtypeStruct((N, C, HW), out_dtype),
        grid_spec=pltpu.PrefetchScalarGridSpec(
            num_scalar_prefetch=0,
            grid=(G,),
            in_specs=[
                pl.BlockSpec((nb, C, HW), lambda g: (g, 0, 0)),
                pl.BlockSpec((nb, C, hw), lambda g: (g, 0, 0)),
                pl.BlockSpec((C, C), lambda g: (0, 0)),
                pl.BlockSpec((C, C), lambda g: (0, 0)),
                pl.BlockSpec((1, C), lambda g: (0, 0)),
                pl.BlockSpec((C, C), lambda g: (0, 0)),
                pl.BlockSpec((1, C), lambda g: (0, 0)),
                pl.BlockSpec((hw, HW), lambda g: (0, 0)),
            ],
            out_specs=pl.BlockSpec((nb, C, HW), lambda g: (g, 0, 0)),
        ),
        compiler_params=pltpu.CompilerParams(
            dimension_semantics=("parallel",),
            vmem_limit_bytes=vmem_limit),
    )(sh_flat, dp_flat, w1aT, w1bT, b1r, w2T, b2r, kb)
    return out_flat.reshape(N, C, H, W)


# ----------------------------------------------------------------------------
# Path A2: medium maps -> single fused per-n kernel, separable two-matmul
# upsample (single HBM read of shallower).
# ----------------------------------------------------------------------------
def _cab_fused_sep(deeper, shallower, wrow, wh, wwT, mat_dtype, vmem_limit):
    N, C, H, W = shallower.shape
    hd, wd = deeper.shape[-2:]
    out_dtype = shallower.dtype
    w1aT, w1bT, b1r, w2T, b2r = wrow

    wh_c = wh.astype(mat_dtype)                        # (H, hd)
    wwT_c = wwT.astype(mat_dtype)                      # (wd, W)
    inv_sh = 1.0 / float(H * W)
    inv_dp = 1.0 / float(hd * wd)

    def kernel(sh_ref, dp_ref, w1aT_ref, w1bT_ref, b1_ref, w2T_ref, b2_ref,
               wh_ref, wwT_ref, out_ref):
        sh = sh_ref[0]                                 # (C, H, W) native dtype
        dp = dp_ref[0]                                 # (C, hd, wd)
        sh_pool = (jnp.sum(jnp.sum(sh.astype(jnp.float32), axis=2), axis=1)
                   * inv_sh)[None, :]                  # (1, C)
        dp_pool = (jnp.sum(jnp.sum(dp.astype(jnp.float32), axis=2), axis=1)
                   * inv_dp)[None, :]
        gate = _gate_rows(sh_pool, dp_pool, w1aT_ref[...], w1bT_ref[...],
                          b1_ref[...], w2T_ref[...], b2_ref[...])     # (1, C)
        gate_c = gate.reshape(C, 1, 1)
        up = _upsample_sep(dp, wh_ref[...], wwT_ref[...],
                           C, H, hd, wd, W, mat_dtype)                # (C, H, W)
        out_ref[0] = (sh.astype(jnp.float32) * gate_c + up).astype(out_ref.dtype)

    return pl.pallas_call(
        kernel,
        out_shape=jax.ShapeDtypeStruct((N, C, H, W), out_dtype),
        grid_spec=pltpu.PrefetchScalarGridSpec(
            num_scalar_prefetch=0,
            grid=(N,),
            in_specs=[
                pl.BlockSpec((1, C, H, W), lambda n: (n, 0, 0, 0)),
                pl.BlockSpec((1, C, hd, wd), lambda n: (n, 0, 0, 0)),
                pl.BlockSpec((C, C), lambda n: (0, 0)),
                pl.BlockSpec((C, C), lambda n: (0, 0)),
                pl.BlockSpec((1, C), lambda n: (0, 0)),
                pl.BlockSpec((C, C), lambda n: (0, 0)),
                pl.BlockSpec((1, C), lambda n: (0, 0)),
                pl.BlockSpec((H, hd), lambda n: (0, 0)),
                pl.BlockSpec((wd, W), lambda n: (0, 0)),
            ],
            out_specs=pl.BlockSpec((1, C, H, W), lambda n: (n, 0, 0, 0)),
        ),
        compiler_params=pltpu.CompilerParams(
            dimension_semantics=("parallel",),
            vmem_limit_bytes=vmem_limit),
    )(shallower, deeper, w1aT, w1bT, b1r, w2T, b2r, wh_c, wwT_c)


# ----------------------------------------------------------------------------
# Path B: large maps -> XLA gate (tiny math, roofline reduction) + Pallas
# kernel tiled over output rows (height pass per tile, then folded width pass).
# ----------------------------------------------------------------------------
def _cab_tiled(deeper, shallower, wrow, wh, wwT, mat_dtype,
               tile_budget, vmem_limit, max_tile_h=None):
    N, C, H, W = shallower.shape
    hd, wd = deeper.shape[-2:]
    out_dtype = shallower.dtype
    itemsize = shallower.dtype.itemsize
    mat_isz = jnp.dtype(mat_dtype).itemsize
    w1aT, w1bT, b1r, w2T, b2r = wrow

    # Channel-attention gate with plain XLA (per perf review: keeps both v7x
    # TensorCores fed at N=1 and drops a kernel launch; the reduction is pure
    # mem-bound work XLA already runs at the HBM roofline).
    sh_pool = jnp.mean(shallower.astype(jnp.float32), axis=(2, 3))    # (N, C)
    dp_pool = jnp.mean(deeper.astype(jnp.float32), axis=(2, 3))
    gate = _gate_rows(sh_pool, dp_pool, w1aT, w1bT, b1r, w2T, b2r)    # (N, C)
    gate = gate.reshape(N, C, 1)

    tH = _pick_tile_h(H, C, W, hd, wd, itemsize, mat_isz, tile_budget, max_tile_h)
    T = pl.cdiv(H, tH)
    wh_c = wh.astype(mat_dtype)                        # (H, hd)
    wwT_c = wwT.astype(mat_dtype)                      # (wd, W)

    def kernel(gate_ref, sh_ref, dp_ref, wh_ref, wwT_ref, out_ref):
        sh = sh_ref[0]                                 # (C, tH, W) native dtype
        dp = dp_ref[0]                                 # (C, hd, wd) -- grid-invariant
        gate_c = gate_ref[0][:, :, None]               # (C, 1, 1) f32
        up = _upsample_sep(dp, wh_ref[...], wwT_ref[...],
                           C, tH, hd, wd, W, mat_dtype)               # (C, tH, W)
        out_ref[0] = (sh.astype(jnp.float32) * gate_c + up).astype(out_ref.dtype)

    return pl.pallas_call(
        kernel,
        out_shape=jax.ShapeDtypeStruct((N, C, H, W), out_dtype),
        grid_spec=pltpu.PrefetchScalarGridSpec(
            num_scalar_prefetch=0,
            grid=(N, T),
            in_specs=[
                pl.BlockSpec((1, C, 1), lambda n, t: (n, 0, 0)),
                pl.BlockSpec((1, C, tH, W), lambda n, t: (n, 0, t, 0)),
                # deeper / wwT index maps are constant across t, so Pallas only
                # re-DMAs them when n changes (review item: no per-tile refetch).
                pl.BlockSpec((1, C, hd, wd), lambda n, t: (n, 0, 0, 0)),
                pl.BlockSpec((tH, hd), lambda n, t: (t, 0)),
                pl.BlockSpec((wd, W), lambda n, t: (0, 0)),
            ],
            out_specs=pl.BlockSpec((1, C, tH, W), lambda n, t: (n, 0, t, 0)),
        ),
        compiler_params=pltpu.CompilerParams(
            dimension_semantics=("parallel", "parallel"),
            vmem_limit_bytes=vmem_limit),
    )(gate, shallower, deeper, wh_c, wwT_c)


# ----------------------------------------------------------------------------
# Public forward.
# ----------------------------------------------------------------------------
def cab_forward(deeper, shallower, params, deepest=False,
                force_path=None, max_tile_h=None):
    """Pallas CAB forward.  deeper: (N, C, h, w), shallower: (N, C, H, W)."""
    N, C, H, W = shallower.shape
    Nd, Cd, hd, wd = deeper.shape
    assert (Nd, Cd) == (N, C)
    if deepest:
        # deepest=True in the reference module requires deeper to already be a
        # pooled (N, C, 1, 1) vector (otherwise torch.cat would fail); pooling a
        # 1x1 map is the identity so the same kernels apply.
        assert (hd, wd) == (1, 1)

    # conv1x1 weights in row-multiplication form, split for the concat.
    w1 = params["w1"].astype(jnp.float32)              # (C, 2C)
    w2 = params["w2"].astype(jnp.float32)              # (C, C)
    b1 = params["b1"].astype(jnp.float32).reshape(1, C)
    b2 = params["b2"].astype(jnp.float32).reshape(1, C)
    wrow = (w1[:, :C].T, w1[:, C:].T, b1, w2.T, b2)

    # Interpolation matrices: f32 math, cast to the input dtype for bf16 inputs
    # so the upsample matmuls stay single-pass on the MXU (f32 accumulation).
    wh = _interp_matrix(H, hd)                         # (H, h)
    ww = _interp_matrix(W, wd)                         # (W, w)
    wwT = ww.T                                         # (w, W)
    mat_dtype = jnp.bfloat16 if shallower.dtype == jnp.bfloat16 else jnp.float32
    mat_isz = jnp.dtype(mat_dtype).itemsize
    itemsize = shallower.dtype.itemsize

    vmem_limit, fused_budget, tile_budget = _hw_budgets()
    HW, hw = H * W, hd * wd
    kb_bytes = hw * HW * mat_isz

    path = force_path
    if path is None:
        if (kb_bytes <= _KRON_BUDGET_BYTES
                and _bytes_a1(1, C, HW, hw, itemsize, mat_isz) <= fused_budget):
            path = "kron"
        elif _bytes_a2(C, H, W, hd, wd, itemsize, mat_isz) <= fused_budget:
            path = "separable"
        else:
            path = "tiled"

    if path == "kron":
        nb = 1
        for cand in range(min(N, 8), 0, -1):           # fold batch, divisors only
            if N % cand == 0 and _bytes_a1(cand, C, HW, hw, itemsize,
                                           mat_isz) <= fused_budget:
                nb = cand
                break
        return _cab_fused_kron(deeper, shallower, wrow, wh, ww, nb,
                               mat_dtype, vmem_limit)
    if path == "separable":
        return _cab_fused_sep(deeper, shallower, wrow, wh, wwT,
                              mat_dtype, vmem_limit)
    return _cab_tiled(deeper, shallower, wrow, wh, wwT, mat_dtype,
                      tile_budget, vmem_limit, max_tile_h)


# ----------------------------------------------------------------------------
# Pure-JAX reference (same math as the PyTorch module).
# ----------------------------------------------------------------------------
def cab_reference(deeper, shallower, params):
    N, C, H, W = shallower.shape
    hd, wd = deeper.shape[-2:]
    sh_pool = jnp.mean(shallower, axis=(2, 3))                 # (N, C)
    dp_pool = jnp.mean(deeper, axis=(2, 3))                    # (N, C)
    gp = jnp.concatenate([sh_pool, dp_pool], axis=1)           # (N, 2C)
    h1 = jnp.maximum(gp @ params["w1"].T + params["b1"], 0.0)
    y = h1 @ params["w2"].T + params["b2"]
    gate = jax.nn.sigmoid(y)[:, :, None, None]
    wh = _interp_matrix(H, hd)
    ww = _interp_matrix(W, wd)
    up = jnp.einsum("Hh,nchw,Ww->ncHW", wh, deeper, ww)
    return shallower * gate + up


if __name__ == "__main__":
    key = jax.random.PRNGKey(0)

    def make_case(k, N, C, H, W, h, w):
        ks = jax.random.split(k, 6)
        shallower = jax.random.normal(ks[0], (N, C, H, W), jnp.float32)
        deeper = jax.random.normal(ks[1], (N, C, h, w), jnp.float32)
        params = {
            "w1": 0.1 * jax.random.normal(ks[2], (C, 2 * C), jnp.float32),
            "b1": 0.1 * jax.random.normal(ks[3], (C,), jnp.float32),
            "w2": 0.1 * jax.random.normal(ks[4], (C, C), jnp.float32),
            "b2": 0.1 * jax.random.normal(ks[5], (C,), jnp.float32),
        }
        return deeper, shallower, params

    keys = jax.random.split(key, 3)
    tol = dict(atol=5e-5, rtol=5e-5)

    # Case 1: small maps -> Path A1 (Kronecker fused, lane-dense flat layout,
    # batch folded: nb=2, single grid step).
    deeper, shallower, params = make_case(keys[0], 2, 32, 16, 16, 8, 8)
    out = jax.block_until_ready(cab_forward(deeper, shallower, params))
    ref = cab_reference(deeper, shallower, params)
    assert out.shape == shallower.shape
    assert jnp.allclose(out, ref, **tol), "case 1 (A1/kron) mismatch vs reference"

    # Case 2: medium maps (Kronecker matrix too big) -> Path A2 (separable
    # fused kernel, single HBM read of shallower).
    deeper, shallower, params = make_case(keys[1], 1, 32, 64, 64, 32, 32)
    out = jax.block_until_ready(cab_forward(deeper, shallower, params))
    ref = cab_reference(deeper, shallower, params)
    assert jnp.allclose(out, ref, **tol), "case 2 (A2/separable) mismatch vs reference"

    # Case 3: force the large-map tiled path (XLA gate + H-tiled Pallas kernel,
    # height-then-width upsample, grid (N=1, T=2), both axes parallel).
    out = jax.block_until_ready(
        cab_forward(deeper, shallower, params, force_path="tiled", max_tile_h=32))
    assert jnp.allclose(out, ref, **tol), "case 3 (tiled) mismatch vs reference"

    # Case 4: deepest=True (deeper already pooled to 1x1) -> A1 with hw == 1.
    deeper, shallower, params = make_case(keys[2], 1, 32, 16, 16, 1, 1)
    out = jax.block_until_ready(cab_forward(deeper, shallower, params, deepest=True))
    ref = cab_reference(deeper, shallower, params)
    assert jnp.allclose(out, ref, **tol), "case 4 (deepest) mismatch vs reference"

    print("KERNEL_OK")
</pallas_src>

<mosaic_0001>
module attributes {stable_mosaic.version = 11 : i64} {
  func.func @kernel(%arg0: i32, %arg1: memref<2x32x256xf32, #tpu.memory_space<vmem>>, %arg2: memref<2x32x64xf32, #tpu.memory_space<vmem>>, %arg3: memref<32x32xf32, #tpu.memory_space<vmem>>, %arg4: memref<32x32xf32, #tpu.memory_space<vmem>>, %arg5: memref<1x32xf32, #tpu.memory_space<vmem>>, %arg6: memref<32x32xf32, #tpu.memory_space<vmem>>, %arg7: memref<1x32xf32, #tpu.memory_space<vmem>>, %arg8: memref<64x256xf32, #tpu.memory_space<vmem>>, %arg9: memref<2x32x256xf32, #tpu.memory_space<vmem>>) attributes {dimension_semantics = [#tpu.dimension_semantics<parallel>], iteration_bounds = array<i64: 1>, scalar_prefetch = 0 : i64, scratch_operands = 0 : i64, tpu.core_type = #tpu.core_type<tc>, window_params = [{transform_indices = @transform_0, window_bounds = array<i64: 2, 32, 256>}, {transform_indices = @transform_1, window_bounds = array<i64: 2, 32, 64>}, {pipeline_mode = #tpu.pipeline_mode<synchronous>, transform_indices = @transform_2, window_bounds = array<i64: 32, 32>}, {pipeline_mode = #tpu.pipeline_mode<synchronous>, transform_indices = @transform_3, window_bounds = array<i64: 32, 32>}, {pipeline_mode = #tpu.pipeline_mode<synchronous>, transform_indices = @transform_4, window_bounds = array<i64: 1, 32>}, {pipeline_mode = #tpu.pipeline_mode<synchronous>, transform_indices = @transform_5, window_bounds = array<i64: 32, 32>}, {pipeline_mode = #tpu.pipeline_mode<synchronous>, transform_indices = @transform_6, window_bounds = array<i64: 1, 32>}, {pipeline_mode = #tpu.pipeline_mode<synchronous>, transform_indices = @transform_7, window_bounds = array<i64: 64, 256>}, {transform_indices = @transform_8, window_bounds = array<i64: 2, 32, 256>}]} {
    %c0 = arith.constant 0 : index
    %c0_0 = arith.constant 0 : index
    %c0_1 = arith.constant 0 : index
    %0 = vector.load %arg1[%c0, %c0_0, %c0_1] : memref<2x32x256xf32, #tpu.memory_space<vmem>>, vector<2x32x256xf32>
    %c0_2 = arith.constant 0 : index
    %c0_3 = arith.constant 0 : index
    %c0_4 = arith.constant 0 : index
    %1 = vector.load %arg2[%c0_2, %c0_3, %c0_4] : memref<2x32x64xf32, #tpu.memory_space<vmem>>, vector<2x32x64xf32>
    %cst = arith.constant dense<0.000000e+00> : vector<2x32xf32>
    %2 = vector.multi_reduction <add>, %0, %cst [2] : vector<2x32x256xf32> to vector<2x32xf32>
    %cst_5 = arith.constant 3.906250e-03 : f32
    %3 = vector.broadcast %cst_5 : f32 to vector<2x32xf32>
    %4 = arith.mulf %2, %3 : vector<2x32xf32>
    %cst_6 = arith.constant dense<0.000000e+00> : vector<2x32xf32>
    %5 = vector.multi_reduction <add>, %1, %cst_6 [2] : vector<2x32x64xf32> to vector<2x32xf32>
    %cst_7 = arith.constant 1.562500e-02 : f32
    %6 = vector.broadcast %cst_7 : f32 to vector<2x32xf32>
    %7 = arith.mulf %5, %6 : vector<2x32xf32>
    %c0_8 = arith.constant 0 : index
    %c0_9 = arith.constant 0 : index
    %8 = vector.load %arg3[%c0_8, %c0_9] : memref<32x32xf32, #tpu.memory_space<vmem>>, vector<32x32xf32>
    %c0_10 = arith.constant 0 : index
    %c0_11 = arith.constant 0 : index
    %9 = vector.load %arg4[%c0_10, %c0_11] : memref<32x32xf32, #tpu.memory_space<vmem>>, vector<32x32xf32>
    %c0_12 = arith.constant 0 : index
    %c0_13 = arith.constant 0 : index
    %10 = vector.load %arg5[%c0_12, %c0_13] : memref<1x32xf32, #tpu.memory_space<vmem>>, vector<1x32xf32>
    %c0_14 = arith.constant 0 : index
    %c0_15 = arith.constant 0 : index
    %11 = vector.load %arg6[%c0_14, %c0_15] : memref<32x32xf32, #tpu.memory_space<vmem>>, vector<32x32xf32>
    %c0_16 = arith.constant 0 : index
    %c0_17 = arith.constant 0 : index
    %12 = vector.load %arg7[%c0_16, %c0_17] : memref<1x32xf32, #tpu.memory_space<vmem>>, vector<1x32xf32>
    %cst_18 = arith.constant dense<0.000000e+00> : vector<2x32xf32>
    %13 = tpu.matmul %4, %8, %cst_18 {dimension_numbers = #tpu.dot_dimension_numbers<[1], [0], [0], [1], [0, 0, 1, 1], [], []>} : vector<2x32xf32>, vector<32x32xf32>, vector<2x32xf32> -> vector<2x32xf32>
    %cst_19 = arith.constant dense<0.000000e+00> : vector<2x32xf32>
    %14 = tpu.matmul %7, %9, %cst_19 {dimension_numbers = #tpu.dot_dimension_numbers<[1], [0], [0], [1], [0, 0, 1, 1], [], []>} : vector<2x32xf32>, vector<32x32xf32>, vector<2x32xf32> -> vector<2x32xf32>
    %15 = arith.addf %13, %14 : vector<2x32xf32>
    %16 = vector.broadcast %10 : vector<1x32xf32> to vector<2x32xf32>
    %17 = arith.addf %15, %16 : vector<2x32xf32>
    %cst_20 = arith.constant 0.000000e+00 : f32
    %18 = vector.broadcast %cst_20 : f32 to vector<2x32xf32>
    %19 = arith.maximumf %17, %18 : vector<2x32xf32>
    %cst_21 = arith.constant dense<0.000000e+00> : vector<2x32xf32>
    %20 = tpu.matmul %19, %11, %cst_21 {dimension_numbers = #tpu.dot_dimension_numbers<[1], [0], [0], [1], [0, 0, 1, 1], [], []>} : vector<2x32xf32>, vector<32x32xf32>, vector<2x32xf32> -> vector<2x32xf32>
    %21 = vector.broadcast %12 : vector<1x32xf32> to vector<2x32xf32>
    %22 = arith.addf %20, %21 : vector<2x32xf32>
    %23 = arith.negf %22 : vector<2x32xf32>
    %24 = math.exp %23 : vector<2x32xf32>
    %cst_22 = arith.constant 1.000000e+00 : f32
    %25 = vector.broadcast %cst_22 : f32 to vector<2x32xf32>
    %26 = arith.addf %25, %24 : vector<2x32xf32>
    %27 = arith.divf %25, %26 : vector<2x32xf32>
    %28 = vector.shape_cast %1 : vector<2x32x64xf32> to vector<64x64xf32>
    %c0_23 = arith.constant 0 : index
    %c0_24 = arith.constant 0 : index
    %29 = vector.load %arg8[%c0_23, %c0_24] : memref<64x256xf32, #tpu.memory_space<vmem>>, vector<64x256xf32>
    %cst_25 = arith.constant dense<0.000000e+00> : vector<64x256xf32>
    %30 = tpu.matmul %28, %29, %cst_25 {dimension_numbers = #tpu.dot_dimension_numbers<[1], [0], [0], [1], [0, 0, 1, 1], [], []>} : vector<64x64xf32>, vector<64x256xf32>, vector<64x256xf32> -> vector<64x256xf32>
    %31 = vector.shape_cast %30 : vector<64x256xf32> to vector<2x32x256xf32>
    %32 = vector.shape_cast %27 : vector<2x32xf32> to vector<2x32x1xf32>
    %33 = vector.broadcast %32 : vector<2x32x1xf32> to vector<2x32x256xf32>
    %34 = arith.mulf %0, %33 : vector<2x32x256xf32>
    %35 = arith.addf %34, %31 : vector<2x32x256xf32>
    %c0_26 = arith.constant 0 : index
    %c0_27 = arith.constant 0 : index
    %c0_28 = arith.constant 0 : index
    %36 = vector.load %arg9[%c0_26, %c0_27, %c0_28] : memref<2x32x256xf32, #tpu.memory_space<vmem>>, vector<2x32x256xf32>
    tpu.vector_store %arg9[%c0_26, %c0_27, %c0_28], %35 {strides = array<i32>} : memref<2x32x256xf32, #tpu.memory_space<vmem>>, vector<2x32x256xf32>,
    return
  }
  func.func @transform_0(%arg0: i32) -> (i32, i32, i32) {
    %c0_i32 = arith.constant 0 : i32
    %c0_i32_0 = arith.constant 0 : i32
    %c0_i32_1 = arith.constant 0 : i32
    return %arg0, %c0_i32, %c0_i32_0 : i32, i32, i32
  }
  func.func @transform_1(%arg0: i32) -> (i32, i32, i32) {
    %c0_i32 = arith.constant 0 : i32
    %c0_i32_0 = arith.constant 0 : i32
    %c0_i32_1 = arith.constant 0 : i32
    return %arg0, %c0_i32, %c0_i32_0 : i32, i32, i32
  }
  func.func @transform_2(%arg0: i32) -> (i32, i32) {
    %c0_i32 = arith.constant 0 : i32
    %c0_i32_0 = arith.constant 0 : i32
    %c0_i32_1 = arith.constant 0 : i32
    return %c0_i32, %c0_i32_0 : i32, i32
  }
  func.func @transform_3(%arg0: i32) -> (i32, i32) {
    %c0_i32 = arith.constant 0 : i32
    %c0_i32_0 = arith.constant 0 : i32
    %c0_i32_1 = arith.constant 0 : i32
    return %c0_i32, %c0_i32_0 : i32, i32
  }
  func.func @transform_4(%arg0: i32) -> (i32, i32) {
    %c0_i32 = arith.constant 0 : i32
    %c0_i32_0 = arith.constant 0 : i32
    %c0_i32_1 = arith.constant 0 : i32
    return %c0_i32, %c0_i32_0 : i32, i32
  }
  func.func @transform_5(%arg0: i32) -> (i32, i32) {
    %c0_i32 = arith.constant 0 : i32
    %c0_i32_0 = arith.constant 0 : i32
    %c0_i32_1 = arith.constant 0 : i32
    return %c0_i32, %c0_i32_0 : i32, i32
  }
  func.func @transform_6(%arg0: i32) -> (i32, i32) {
    %c0_i32 = arith.constant 0 : i32
    %c0_i32_0 = arith.constant 0 : i32
    %c0_i32_1 = arith.constant 0 : i32
    return %c0_i32, %c0_i32_0 : i32, i32
  }
  func.func @transform_7(%arg0: i32) -> (i32, i32) {
    %c0_i32 = arith.constant 0 : i32
    %c0_i32_0 = arith.constant 0 : i32
    %c0_i32_1 = arith.constant 0 : i32
    return %c0_i32, %c0_i32_0 : i32, i32
  }
  func.func @transform_8(%arg0: i32) -> (i32, i32, i32) {
    %c0_i32 = arith.constant 0 : i32
    %c0_i32_0 = arith.constant 0 : i32
    %c0_i32_1 = arith.constant 0 : i32
    return %arg0, %c0_i32, %c0_i32_0 : i32, i32, i32
  }
}

</mosaic_0001>

<bundles_post_ra>
// kernel: tpu_custom_call.1
= control target key start
LH: loop header
LB: loop body
LE: loop exit
PB: predicated region body
PF: predicated region fallthrough
CT: control target
= control target key end

     0   :  { %13 = vsyncpa [#allocation3], 0  ;;  %s1437_s0 = inlined_call_operand.hbm [shape: f32[2,32,256], index: 0, kind: input, shape index: {}]   ;;  %s1438_s1 = inlined_call_operand.hbm [shape: f32[2,32,64], index: 1, kind: input, shape index: {}]   ;;  %s1439_s2 = inlined_call_operand.hbm [shape: f32[32,32], index: 2, kind: input, shape index: {}]   ;;  %s1440_s3 = inlined_call_operand.hbm [shape: f32[32,32], index: 3, kind: input, shape index: {}]   ;;  %s1441_s4 = inlined_call_operand.vmem [shape: f32[1,32], index: 4, kind: input, shape index: {}]   ;;  %s1442_s5 = inlined_call_operand.hbm [shape: f32[32,32], index: 5, kind: input, shape index: {}]   ;;  %s1443_s6 = inlined_call_operand.vmem [shape: f32[1,32], index: 6, kind: input, shape index: {}]   ;;  %s1444_s7 = inlined_call_operand.hbm [shape: f32[64,256], index: 7, kind: input, shape index: {}]   ;;  %s1445_s8 = inlined_call_operand.hbm [shape: f32[2,32,256], index: 8, kind: output, shape index: {}]  }
   0x1   :  { %14 = vsyncpa [#allocation6], 0 }
   0x2   :  { %15 = vsyncpa [#allocation9], 0 }
   0x3   :  { %16 = vsyncpa [#allocation12], 0 }
   0x4   :  { %17 = vsyncpa [#allocation4], 0  ;;  %s1101_s27 = smov [#allocation5]   ;;  %s937_s9 = scalar_lea.hbm %s1438_s1, 1024 }
   0x5   :  { %s35_s28 = sshll.u32 %s1101_s27, 4  ;;  %p938_p0 = scmp.ne.s32.totalorder %s1438_s1, %s937_s9  ;;  %s36_s28 = int_to_ptr.vmem [resolvable:$true] %s35_s28 }
   0x6   :  { %p941_p1 = scmp.lt.u32.totalorder %s937_s9, %s1438_s1 }
   0x8   :  { %p943_p2 = pnand %p941_p1, %p938_p0 }
   0xa   :  { %946 = shalt.err (!%p943_p2)
}
   0xb   :  { %s947_s14 = scalar_lea.vmem %s36_s28, 1024  ;;  %p952_p4 = scmp.lt.s32.totalorder %s36_s28, %s36_s28 }
   0xc   :  { %p948_p3 = scmp.ne.s32.totalorder %s36_s28, %s947_s14  ;;  %p953_p5 = scmp.lt.s32.totalorder %s947_s14, %s947_s14 }
   0xe   :  { %p954_p6 = por %p953_p5, %p952_p4 }
  0x10   :  { %p955_p7 = pnand %p954_p6, %p948_p3 }
  0x12   :  { %958 = shalt.err (!%p955_p7)
}
  0x13   :  { %s1102_s15 = smov 128   ;;  %s1103_s16 = smov 8  }
  0x14   :  { %41 = dma.hbm_to_vmem [thread:$0]  %s1438_s1, 1024, %s36_s28, [#allocation6], %s1102_s15, %s1102_s15, %s1103_s16  }
  0x15   :  { %s1104_s19 = smov [#allocation8]   ;;  %s1105_s21 = smov [#allocation2]  }
  0x16   :  { %s59_s20 = sshll.u32 %s1104_s19, 4  ;;  %s23_s22 = sshll.u32 %s1105_s21, 4  ;;  %s60_s20 = int_to_ptr.vmem [resolvable:$true] %s59_s20  ;;  %s24_s22 = int_to_ptr.vmem [resolvable:$true] %s23_s22 }
  0x17   :  { %s959_s25 = scalar_lea.hbm %s1440_s3, 512 }
  0x18   :  { %p960_p8 = scmp.ne.s32.totalorder %s1440_s3, %s959_s25  ;;  %p963_p9 = scmp.lt.u32.totalorder %s959_s25, %s1440_s3 }
  0x1a   :  { %p965_p10 = pnand %p963_p9, %p960_p8 }
  0x1c   :  { %968 = shalt.err (!%p965_p10)
}
  0x1d   :  { %s969_s1 = scalar_lea.vmem %s60_s20, 512  ;;  %p974_p12 = scmp.lt.s32.totalorder %s60_s20, %s60_s20 }
  0x1e   :  { %p970_p11 = scmp.ne.s32.totalorder %s60_s20, %s969_s1  ;;  %p975_p13 = scmp.lt.s32.totalorder %s969_s1, %s969_s1 }
  0x20   :  { %p976_p0 = por %p975_p13, %p974_p12 }
  0x22   :  { %p977_p1 = pnand %p976_p0, %p970_p11 }
  0x24   :  { %980 = shalt.err (!%p977_p1)
}
  0x25   :  { %65 = dma.hbm_to_vmem [thread:$0]  %s1440_s3, 512, %s60_s20, [#allocation9], %s1102_s15, %s1102_s15, %s1103_s16  }
  0x26   :  { %s981_s12 = scalar_lea.hbm %s1437_s0, 2048 }
  0x27   :  { %p982_p2 = scmp.ne.s32.totalorder %s1437_s0, %s981_s12  ;;  %p985_p3 = scmp.lt.u32.totalorder %s981_s12, %s1437_s0 }
  0x29   :  { %p987_p4 = pnand %p985_p3, %p982_p2 }
  0x2b   :  { %990 = shalt.err (!%p987_p4)
}
  0x2c   :  { %s991_s19 = scalar_lea.vmem %s24_s22, 2048  ;;  %p996_p6 = scmp.lt.s32.totalorder %s24_s22, %s24_s22 }
  0x2d   :  { %p992_p5 = scmp.ne.s32.totalorder %s24_s22, %s991_s19  ;;  %p997_p7 = scmp.lt.s32.totalorder %s991_s19, %s991_s19 }
  0x2f   :  { %p998_p8 = por %p997_p7, %p996_p6 }
  0x31   :  { %p999_p9 = pnand %p998_p8, %p992_p5 }
  0x33   :  { %1002 = shalt.err (!%p999_p9)
}
  0x34   :  { %s1106_s3 = smov 256   ;;  %s1107_s20 = smov 16  }
  0x35   :  { %29 = dma.hbm_to_vmem [thread:$0]  %s1437_s0, 2048, %s24_s22, [#allocation3], %s1106_s3, %s1106_s3, %s1107_s20  }
  0x36   :  { %s1108_s24 = smov [#allocation7]   ;;  %s1109_s26 = smov [#allocation10]  }
  0x37   :  { %s47_s25 = sshll.u32 %s1108_s24, 4  ;;  %s73_s27 = sshll.u32 %s1109_s26, 4  ;;  %s48_s25 = int_to_ptr.vmem [resolvable:$true] %s47_s25  ;;  %s74_s27 = int_to_ptr.vmem [resolvable:$true] %s73_s27 }
  0x38   :  { %s1003_s1 = scalar_lea.hbm %s1439_s2, 512 }
  0x39   :  { %p1004_p10 = scmp.ne.s32.totalorder %s1439_s2, %s1003_s1  ;;  %p1007_p11 = scmp.lt.u32.totalorder %s1003_s1, %s1439_s2 }
  0x3b   :  { %p1009_p12 = pnand %p1007_p11, %p1004_p10 }
  0x3d   :  { %1012 = shalt.err (!%p1009_p12)
}
  0x3e   :  { %s1013_s0 = scalar_lea.vmem %s48_s25, 512  ;;  %p1018_p0 = scmp.lt.s32.totalorder %s48_s25, %s48_s25 }
  0x3f   :  { %p1014_p13 = scmp.ne.s32.totalorder %s48_s25, %s1013_s0  ;;  %p1019_p1 = scmp.lt.s32.totalorder %s1013_s0, %s1013_s0 }
  0x41   :  { %p1020_p2 = por %p1019_p1, %p1018_p0 }
  0x43   :  { %p1021_p3 = pnand %p1020_p2, %p1014_p13 }
  0x45   :  { %1024 = shalt.err (!%p1021_p3)
}
  0x46   :  { %53 = dma.hbm_to_vmem [thread:$0]  %s1439_s2, 512, %s48_s25, [#allocation6], %s1102_s15, %s1102_s15, %s1103_s16  }
  0x47   :  { %s1025_s17 = scalar_lea.hbm %s1442_s5, 512 }
  0x48   :  { %p1026_p4 = scmp.ne.s32.totalorder %s1442_s5, %s1025_s17  ;;  %p1029_p5 = scmp.lt.u32.totalorder %s1025_s17, %s1442_s5 }
  0x4a   :  { %p1031_p6 = pnand %p1029_p5, %p1026_p4 }
  0x4c   :  { %1034 = shalt.err (!%p1031_p6)
}
  0x4d   :  { %s1035_s24 = scalar_lea.vmem %s74_s27, 512  ;;  %p1040_p8 = scmp.lt.s32.totalorder %s74_s27, %s74_s27 }
  0x4e   :  { %p1036_p7 = scmp.ne.s32.totalorder %s74_s27, %s1035_s24  ;;  %p1041_p9 = scmp.lt.s32.totalorder %s1035_s24, %s1035_s24 }
  0x50   :  { %p1042_p10 = por %p1041_p9, %p1040_p8 }
  0x52   :  { %p1043_p11 = pnand %p1042_p10, %p1036_p7 }
  0x54   :  { %1046 = shalt.err (!%p1043_p11)
}
  0x55   :  { %79 = dma.hbm_to_vmem [thread:$0]  %s1442_s5, 512, %s74_s27, [#allocation9], %s1102_s15, %s1102_s15, %s1103_s16  }
  0x56   :  { %s1110_s26 = smov [#allocation11]   ;;  %s1047_s28 = scalar_lea.hbm %s1444_s7, 2048 }
  0x57   :  { %s87_s29 = sshll.u32 %s1110_s26, 4  ;;  %p1048_p12 = scmp.ne.s32.totalorder %s1444_s7, %s1047_s28  ;;  %s88_s29 = int_to_ptr.vmem [resolvable:$true] %s87_s29 }
  0x58   :  { %p1051_p13 = scmp.lt.u32.totalorder %s1047_s28, %s1444_s7 }
  0x5a   :  { %p1053_p0 = pnand %p1051_p13, %p1048_p12 }
  0x5c   :  { %1056 = shalt.err (!%p1053_p0)
}
  0x5d   :  { %s1057_s22 = scalar_lea.vmem %s88_s29, 2048  ;;  %p1062_p2 = scmp.lt.s32.totalorder %s88_s29, %s88_s29 }
  0x5e   :  { %p1058_p1 = scmp.ne.s32.totalorder %s88_s29, %s1057_s22  ;;  %p1063_p3 = scmp.lt.s32.totalorder %s1057_s22, %s1057_s22 }
  0x60   :  { %p1064_p4 = por %p1063_p3, %p1062_p2 }
  0x62   :  { %p1065_p5 = pnand %p1064_p4, %p1058_p1 }
  0x64   :  { %1068 = shalt.err (!%p1065_p5)
}
  0x65   :  { %93 = dma.hbm_to_vmem [thread:$0]  %s1444_s7, 2048, %s88_s29, [#allocation12], %s1106_s3, %s1106_s3, %s1107_s20  }
  0x66   :  { %1091 = dma.done.wait [#allocation3], 2048  }
  0x67   :  { %1092 = vsyncadd [#allocation3], 4294965248 }
  0x68   :  { %1093 = dma.done.wait [#allocation6], 1536  }
  0x69   :  { %1094 = vsyncadd [#allocation6], 4294965760 }
  0x6a   :  { %1095 = dma.done.wait [#allocation9], 1024  }
  0x6b   :  { %1096 = vsyncadd [#allocation9], 4294966272 }
  0x6c   :  { %1097 = dma.done.wait [#allocation12], 2048  }
  0x6d   :  { %1098 = vsyncadd [#allocation12], 4294965248  ;;  %vm168_vm0 = vcmask 523264   ;;  %v1250_v0 = vld [vmem:[#allocation5 + $0x8] sm:$0xff]  ;;  %v1252_v1 = vld [vmem:[#allocation5] sm:$0xff]  ;;  %v1111_v43 = vmov 0.0|0.0   ;;  %v223_v58 = vlaneseq }
  0x6e   :  { %v1254_v2 = vld [vmem:[#allocation2 + $0x40] sm:$0xff]  ;;  %v172_v3 = vsel %vm168_vm0, %v1250_v0, 0.0  ;;  %v169_v4 = vsel %vm168_vm0, %v1252_v1, 0.0  ;;  %v1260_v5 = vld [vmem:[#allocation2 + $0x48] sm:$0xff]  ;;  %v1270_v10 = vld [vmem:[#allocation2 + $0x50] sm:$0xff]  ;;  %883 = vmatprep.subr.bf16.mxu1 %v1111_v43  ;;  %877 = vmatprep.subr.bf16.mxu0 %v1111_v43  ;;  %vm1112_vm1 = vmmov 0  }
  0x6f   :  { %v1262_v6 = vld [vmem:[#allocation2] sm:$0xff]  ;;  %v1264_v7 = vld [vmem:[#allocation2 + $0x8] sm:$0xff]  ;;  %173 = vadd.xlane.f32.xlu1 %v172_v3  ;;  %170 = vadd.xlane.f32.xlu0 %v169_v4  ;;  %v148_v8 = vadd.f32 %v1260_v5, %v1254_v2  ;;  %v1272_v11 = vld [vmem:[#allocation2 + $0x58] sm:$0xff]  ;;  %v1113_v52 = vmov 0.0   ;;  %v224_v61 = vand.u32 127, %v223_v58  ;;  %v1339_v3 = vshrl.u32 %v223_v58, 7 }
  0x70   :  { %v136_v9 = vadd.f32 %v1264_v7, %v1262_v6  ;;  %v1274_v12 = vld [vmem:[#allocation2 + $0x10] sm:$0xff]  ;;  %v1276_v13 = vld [vmem:[#allocation2 + $0x18] sm:$0xff]  ;;  %v151_v14 = vadd.f32 %v1272_v11, %v1270_v10  ;;  %v1282_v16 = vld [vmem:[#allocation5 + $0x28] sm:$0xff]  ;;  %863 = vmatprep.mubr.msk.f32.mxu1 %vm1112_vm1, %v1113_v52  ;;  %852 = vmatprep.mubr.msk.f32.mxu0 %vm1112_vm1, %v1113_v52  ;;  %vm234_vm2 = vcmask 130112   ;;  %vm241_vm3 = vcmask 195712  }
  0x71   :  { %v139_v15 = vadd.f32 %v1276_v13, %v1274_v12  ;;  %v1284_v17 = vld [vmem:[#allocation5 + $0x20] sm:$0xff]  ;;  %v184_v19 = vsel %vm168_vm0, %v1282_v16, 0.0  ;;  %v1292_v21 = vld [vmem:[#allocation2 + $0x68] sm:$0xff]  ;;  %v1302_v26 = vld [vmem:[#allocation5 + $0x30] sm:$0xff]  ;;  %v229_v4 = vadd.s32 4294967288, %v224_v61  ;;  %vm248_vm4 = vcmask 261312  }
  0x72   :  { %v1286_v18 = vld [vmem:[#allocation2 + $0x60] sm:$0xff]  ;;  %v181_v20 = vsel %vm168_vm0, %v1284_v17, 0.0  ;;  %v1296_v23 = vld [vmem:[#allocation2 + $0x28] sm:$0xff]  ;;  %v1304_v27 = vld [vmem:[#allocation5 + $0x10] sm:$0xff]  ;;  %v187_v29 = vsel %vm168_vm0, %v1302_v26, 0.0  ;;  %vm269_vm5 = vcmask 1041409  }
  0x73   :  { %149 = vadd.xlane.f32.xlu1 %v148_v8  ;;  %137 = vadd.xlane.f32.xlu0 %v136_v9  ;;  %v1294_v22 = vld [vmem:[#allocation2 + $0x20] sm:$0xff]  ;;  %v154_v24 = vadd.f32 %v1292_v21, %v1286_v18  ;;  %v1306_v28 = vld [vmem:[#allocation2 + $0x70] sm:$0xff]  ;;  %v175_v30 = vsel %vm168_vm0, %v1304_v27, 0.0  ;;  %v1312_v31 = vld [vmem:[#allocation2 + $0x78] sm:$0xff]  ;;  %v236_v8 = vadd.s32 4294967280, %v224_v61  ;;  %vm271_vm6 = vcmask 261120  }
  0x74   :  { %v142_v25 = vadd.f32 %v1296_v23, %v1294_v22  ;;  %v1314_v32 = vld [vmem:[#allocation2 + $0x30] sm:$0xff]  ;;  %v1316_v33 = vld [vmem:[#allocation2 + $0x38] sm:$0xff]  ;;  %v157_v34 = vadd.f32 %v1312_v31, %v1306_v28  ;;  %v201_v40 = vld [vmem:[#allocation7] sm:$0xff] }
  0x75   :  { %v145_v35 = vadd.f32 %v1316_v33, %v1314_v32  ;;  %v1322_v36 = vld [vmem:[#allocation5 + $0x38] sm:$0xff]  ;;  %v202_v41 = vld [vmem:[#allocation7 + $0x8] sm:$0xff]  ;;  %v205_v44 = vld [vmem:[#allocation8] sm:$0xff] }
  0x76   :  { %v1324_v37 = vld [vmem:[#allocation5 + $0x18] sm:$0xff]  ;;  %v190_v38 = vsel %vm168_vm0, %v1322_v36, 0.0  ;;  %v884_v42 = vpack.c.bf16 %v202_v41, %v201_v40  ;;  %v206_v45 = vld [vmem:[#allocation8 + $0x8] sm:$0xff]  ;;  %v203_v46 = vld [vmem:[#allocation7 + $0x10] sm:$0xff] }
  0x77   :  { %152 = vadd.xlane.f32.xlu1 %v151_v14  ;;  %140 = vadd.xlane.f32.xlu0 %v139_v15  ;;  %v178_v39 = vsel %vm168_vm0, %v1324_v37, 0.0  ;;  %v878_v47 = vpack.c.bf16 %v206_v45, %v205_v44  ;;  %v204_v48 = vld [vmem:[#allocation7 + $0x18] sm:$0xff]  ;;  %v207_v50 = vld [vmem:[#allocation8 + $0x10] sm:$0xff]  ;;  %v243_v15 = vadd.s32 4294967272, %v224_v61 }
  0x78   :  { %885 = vmatpush3.bf16.msra.mxu1 %v884_v42  ;;  %v887_v49 = vpack.c.bf16 %v204_v48, %v203_v46  ;;  %v208_v51 = vld [vmem:[#allocation8 + $0x18] sm:$0xff] }
  0x79   :  { %886 = vmatprep.subr.bf16.mxu1 %v1111_v43  ;;  %879 = vmatpush3.bf16.msra.mxu0 %v878_v47  ;;  %v881_v53 = vpack.c.bf16 %v208_v51, %v207_v50  ;;  %v246_v41 = vsub.s32 %v243_v15, %v1339_v3 }
  0x7a   :  { %880 = vmatprep.subr.bf16.mxu0 %v1111_v43 }
  0x7b   :  { %185 = vadd.xlane.f32.xlu1 %v184_v19  ;;  %182 = vadd.xlane.f32.xlu0 %v181_v20 }
  0x7c   :  { %888 = vmatpush3.bf16.msra.mxu1 %v887_v49 }
  0x7d   :  { %882 = vmatpush3.bf16.msra.mxu0 %v881_v53 }
  0x7e   :  { %889 = vmatprep.subr.bf16.mxu0 %v1111_v43 }
  0x7f   :  { %155 = vadd.xlane.f32.xlu1 %v154_v24  ;;  %143 = vadd.xlane.f32.xlu0 %v142_v25  ;;  %v232_v24 = vsub.s32 %v229_v4, %v1339_v3 }
  0x83   :  { %188 = vadd.xlane.f32.xlu1 %v187_v29  ;;  %176 = vadd.xlane.f32.xlu0 %v175_v30  ;;  %v227_v30 = vsub.s32 %v224_v61, %v1339_v3 }
  0x87   :  { %158 = vadd.xlane.f32.xlu1 %v157_v34  ;;  %146 = vadd.xlane.f32.xlu0 %v145_v35  ;;  %v239_v34 = vsub.s32 %v236_v8, %v1339_v3 }
  0x8b   :  { %191 = vadd.xlane.f32.xlu1 %v190_v38  ;;  %179 = vadd.xlane.f32.xlu0 %v178_v39 }
  0xfc   :  { %v174_v54 = vpop.xlane.xlu1 %173  ;;  %v171_v55 = vpop.xlane.xlu0 %170 }
  0xfd   :  { %v194_v42 = vmul.f32 0.015625, %v174_v54  ;;  %v193_v44 = vmul.f32 0.015625, %v171_v55 }
  0xff   :  { %v233_v4 = vrot.slane %v194_v42, %v232_v24  ;;  %v228_v8 = vrot.slane %v193_v44, %v227_v30 }
 0x100   :  { %v150_v56 = vpop.xlane.xlu1 %149  ;;  %v138_v57 = vpop.xlane.xlu0 %137 }
 0x101   :  { %v164_v25 = vmul.f32 0.00390625, %v150_v56  ;;  %v160_v29 = vmul.f32 0.00390625, %v138_v57 }
 0x103   :  { %v374_v47 = vrot.slane %v164_v25, %v227_v30  ;;  %v355_v48 = vrot.slane %v160_v29, %v227_v30 }
 0x104   :  { %v153_v59 = vpop.xlane.xlu1 %152  ;;  %v141_v60 = vpop.xlane.xlu0 %140 }
 0x105   :  { %v165_v19 = vmul.f32 0.00390625, %v153_v59  ;;  %v161_v20 = vmul.f32 0.00390625, %v141_v60 }
 0x107   :  { %v378_v45 = vrot.slane %v165_v19, %v232_v24  ;;  %v359_v46 = vrot.slane %v161_v20, %v232_v24 }
 0x108   :  { %v186_v62 = vpop.xlane.xlu1 %185  ;;  %v183_v63 = vpop.xlane.xlu0 %182 }
 0x109   :  { %v198_v49 = vmul.f32 0.015625, %v186_v62  ;;  %v197_v50 = vmul.f32 0.015625, %v183_v63  ;;  %v379_v54 = vsel %vm234_vm2, %v378_v45, %v374_v47  ;;  %v360_v55 = vsel %vm234_vm2, %v359_v46, %v355_v48 }
 0x10c   :  { %v156_v9 = vpop.xlane.xlu1 %155  ;;  %v144_v14 = vpop.xlane.xlu0 %143 }
 0x10d   :  { %v166_v35 = vmul.f32 0.00390625, %v156_v9  ;;  %v162_v38 = vmul.f32 0.00390625, %v144_v14  ;;  %v257_v9 = vrot.slane %v198_v49, %v232_v24  ;;  %v253_v14 = vrot.slane %v197_v50, %v227_v30 }
 0x10e   :  { %v235_v24 = vsel %vm234_vm2, %v233_v4, %v228_v8  ;;  %v558_v8 = vld [vmem:[#allocation11 + $0x10] sm:$0xff] }
 0x10f   :  { %v383_v51 = vrot.slane %v166_v35, %v239_v34  ;;  %v364_v53 = vrot.slane %v162_v38, %v239_v34  ;;  %v258_v30 = vsel %vm234_vm2, %v257_v9, %v253_v14 }
 0x110   :  { %v189_v39 = vpop.xlane.xlu1 %188  ;;  %v177_v40 = vpop.xlane.xlu0 %176 }
 0x111   :  { %v199_v56 = vmul.f32 0.015625, %v189_v39  ;;  %v195_v57 = vmul.f32 0.015625, %v177_v40  ;;  %v384_v15 = vsel %vm241_vm3, %v383_v51, %v379_v54  ;;  %v365_v19 = vsel %vm241_vm3, %v364_v53, %v360_v55  ;;  %v211_v51 = vld [vmem:[#allocation10 + $0x8] sm:$0xff]  ;;  %v563_v55 = vld [vmem:[#allocation11 + $0x38] sm:$0xff] }
 0x112   :  { %v561_v54 = vld [vmem:[#allocation11 + $0x28] sm:$0xff] }
 0x113   :  { %v262_v20 = vrot.slane %v199_v56, %v239_v34  ;;  %v240_v25 = vrot.slane %v195_v57, %v239_v34  ;;  %v212_v56 = vld [vmem:[#allocation10 + $0x10] sm:$0xff]  ;;  %v213_v57 = vld [vmem:[#allocation10 + $0x18] sm:$0xff]  ;;  %v899_v14 = vpack.c.bf16 %v563_v55, %v561_v54 }
 0x114   :  { %v159_v58 = vpop.xlane.xlu1 %158  ;;  %v147_v59 = vpop.xlane.xlu0 %146 }
 0x115   :  { %v167_v60 = vmul.f32 0.00390625, %v159_v58  ;;  %v163_v61 = vmul.f32 0.00390625, %v147_v59  ;;  %v263_v34 = vsel %vm241_vm3, %v262_v20, %v258_v30  ;;  %v242_v47 = vsel %vm241_vm3, %v240_v25, %v235_v24  ;;  %v557_v59 = vld [vmem:[#allocation11 + $0x8] sm:$0xff]  ;;  %v564_v25 = vld [vmem:[#allocation11 + $0x40] sm:$0xff] }
 0x116   :  { %v893_v58 = vpack.c.bf16 %v213_v57, %v212_v56 }
 0x117   :  { %v388_v62 = vrot.slane %v167_v60, %v246_v41  ;;  %v369_v63 = vrot.slane %v163_v61, %v246_v41  ;;  %v559_v60 = vld [vmem:[#allocation11 + $0x18] sm:$0xff]  ;;  %v556_v61 = vld [vmem:[#allocation11] sm:$0xff] }
 0x118   :  { %v192_v29 = vpop.xlane.xlu1 %191  ;;  %v180_v35 = vpop.xlane.xlu0 %179  ;;  %v895_v4 = vpack.c.bf16 %v559_v60, %v557_v59  ;;  %v897_v9 = vpack.c.bf16 %v558_v8, %v556_v61  ;;  %v711_v61 = vsub.s32 0, %v1339_v3 }
 0x119   :  { %v200_v38 = vmul.f32 0.015625, %v192_v29  ;;  %v196_v39 = vmul.f32 0.015625, %v180_v35  ;;  %v370_v40 = vsel %vm248_vm4, %v369_v63, %v365_v19  ;;  %v389_v42 = vsel %vm248_vm4, %v388_v62, %v384_v15  ;;  %v560_v62 = vld [vmem:[#allocation11 + $0x20] sm:$0xff]  ;;  %v562_v63 = vld [vmem:[#allocation11 + $0x30] sm:$0xff]  ;;  %v567_v19 = vld [vmem:[#allocation11 + $0x58] sm:$0xff] }
 0x11a   :  { %v390_v44 = vsel %vm269_vm5, %v389_v42, %v370_v40  ;;  %911 = vmatprep.subr.bf16.mxu1 %v895_v4  ;;  %v901_v15 = vpack.c.bf16 %v562_v63, %v560_v62  ;;  %v566_v29 = vld [vmem:[#allocation11 + $0x50] sm:$0xff]  ;;  %v568_v42 = vld [vmem:[#allocation11 + $0x60] sm:$0xff]  ;;  %v730_v62 = vsub.s32 1, %v1339_v3 }
 0x11b   :  { %v267_v45 = vrot.slane %v200_v38, %v246_v41  ;;  %v247_v46 = vrot.slane %v196_v39, %v246_v41  ;;  %864 = vmatmul.mubr.msk.f32.vlgmr.msra.gmra.mrb[0].mxu1 %vm271_vm6, %v390_v44  ;;  %v210_v41 = vld [vmem:[#allocation10] sm:$0xff]  ;;  %v905_v35 = vpack.c.bf16 %v566_v29, %v564_v25  ;;  %v569_v38 = vld [vmem:[#allocation11 + $0x68] sm:$0xff]  ;;  %v571_v39 = vld [vmem:[#allocation11 + $0x78] sm:$0xff] }
 0x11c   :  { %678 = vmatprep.mubr.f32.mxu1 %v1113_v52  ;;  %v890_v53 = vpack.c.bf16 %v211_v51, %v210_v41  ;;  %915 = vmatpush1.bf16.msra.mxu1 %v897_v9  ;;  %v907_v40 = vpack.c.bf16 %v571_v39, %v569_v38  ;;  %v570_v44 = vld [vmem:[#allocation11 + $0x70] sm:$0xff] }
 0x11d   :  { %v249_v48 = vsel %vm248_vm4, %v247_v46, %v242_v47  ;;  %v268_v49 = vsel %vm248_vm4, %v267_v45, %v263_v34  ;;  %912 = vmatprep.subr.bf16.mxu1 %v899_v14  ;;  %v909_v24 = vpack.c.bf16 %v570_v44, %v568_v42 }
 0x11e   :  { %v270_v50 = vsel %vm269_vm5, %v268_v49, %v249_v48 }
 0x11f   :  { %853 = vmatmul.mubr.msk.f32.vlgmr.msra.gmra.mrb[0].mxu0 %vm271_vm6, %v270_v50 }
 0x120   :  { %874 = vmatprep.mubr.msk.f32.mxu0 %vm1112_vm1, %v1113_v52  ;;  %891 = vmatpush3.bf16.msra.mxu0 %v890_v53 }
 0x121   :  { %892 = vmatprep.subr.bf16.mxu0 %v1111_v43  ;;  %v565_v43 = vld [vmem:[#allocation11 + $0x48] sm:$0xff]  ;;  %916 = vmatpush1.bf16.msra.mxu1 %v901_v15 }
 0x122   :  { %v903_v20 = vpack.c.bf16 %v567_v19, %v565_v43 }
 0x124   :  { %894 = vmatpush3.bf16.msra.mxu0 %v893_v58  ;;  %913 = vmatprep.subr.bf16.mxu1 %v903_v20 }
 0x125   :  { %896 = vmatprep.subr.bf16.mxu0 %v895_v4  ;;  %917 = vmatpush1.bf16.msra.mxu1 %v905_v35 }
 0x126   :  { %914 = vmatprep.subr.bf16.mxu1 %v907_v40 }
 0x129   :  { %918 = vmatpush1.bf16.msra.mxu1 %v909_v24 }
 0x12c   :  { %824 = vmatmul.mubr.msk.f32.vlgmr.msra.gmra.mrb[2].mxu1 %vm168_vm0, %v1324_v37 }
 0x12d   :  { %684 = vmatprep.mubr.f32.mxu1 %v1113_v52 }
 0x130   :  { %825 = vmatmul.mubr.msk.f32.gmra.mrb[4].mxu1 %vm168_vm0, %v1284_v17  ;;  %v817_v17 = vld [vmem:[%s1441_s4] ss:$0 sm:$0xff] }
 0x131   :  { %690 = vmatprep.mubr.f32.mxu1 %v1113_v52 }
 0x134   :  { %826 = vmatmul.mubr.msk.f32.gmra.mrb[6].mxu1 %vm168_vm0, %v1282_v16 }
 0x135   :  { %696 = vmatprep.mubr.f32.mxu1 %v1113_v52 }
 0x138   :  { %827 = vmatmul.mubr.msk.f32.gmra.mrb[8].mxu1 %vm168_vm0, %v1302_v26 }
 0x139   :  { %702 = vmatprep.mubr.f32.mxu1 %v1113_v52 }
 0x13c   :  { %828 = vmatmul.mubr.msk.f32.gmra.mrb[10].mxu1 %vm168_vm0, %v1322_v36  ;;  %v818_v36 = vld [vmem:[%s1443_s6] ss:$0 sm:$0xff]  ;;  %s1114_s6 = smov [#allocation13]  }
 0x13d   :  { %s800_s12 = sshll.u32 %s1114_s6, 4  ;;  %s801_s12 = int_to_ptr.vmem [resolvable:$true] %s800_s12 }
 0x13e   :  { %s1069_s13 = scalar_lea.vmem %s801_s12, 2048  ;;  %p1074_p7 = scmp.lt.s32.totalorder %s801_s12, %s801_s12 }
 0x13f   :  { %p1070_p6 = scmp.ne.s32.totalorder %s801_s12, %s1069_s13  ;;  %p1075_p8 = scmp.lt.s32.totalorder %s1069_s13, %s1069_s13 }
 0x141   :  { %p1076_p9 = por %p1075_p8, %p1074_p7 }
 0x143   :  { %p1077_p10 = pnand %p1076_p9, %p1070_p6 }
 0x1ee   :  { %v459_v37 = vpop.f32.mrb[0].mxu1 }
 0x1ef   :  { %v865_v30 = vpop.f32.mrb[1].mxu1 }
 0x1f2   :  { %v340_v45 = vpop.f32.mrb[0].mxu0 }
 0x1f3   :  { %v460_v46 = vadd.f32 %v459_v37, %v340_v45  ;;  %v854_v34 = vpop.f32.mrb[1].mxu0 }
 0x1f5   :  { %v469_v16 = vadd.f32 %v817_v17, %v460_v46 }
 0x1f7   :  { %v470_v47 = vmax.f32 %v469_v16, 0.0 }
 0x1f9   :  { %875 = vmatmul.mubr.msk.f32.vlgmr.msra.gmra.mrb[2].mxu0 %vm271_vm6, %v470_v47 }
 0x1fa   :  { %898 = vmatpush1.bf16.msra.mxu0 %v897_v9  ;;  %660 = vmatprep.mubr.f32.mxu0 %v1113_v52 }
 0x1fb   :  { %900 = vmatprep.subr.bf16.mxu0 %v899_v14 }
 0x1fe   :  { %902 = vmatpush1.bf16.msra.mxu0 %v901_v15 }
 0x1ff   :  { %904 = vmatprep.subr.bf16.mxu0 %v903_v20  ;;  %v1392_v26 = vpop.f32.mrb[2].mxu1 }
 0x202   :  { %906 = vmatpush1.bf16.msra.mxu0 %v905_v35 }
 0x203   :  { %908 = vmatprep.subr.bf16.mxu0 %v907_v40 }
 0x206   :  { %910 = vmatpush1.bf16.msra.mxu0 %v909_v24 }
 0x209   :  { %821 = vmatmul.mubr.msk.f32.vlgmr.msra.gmra.mrb[4].mxu0 %vm168_vm0, %v1252_v1 }
 0x20a   :  { %666 = vmatprep.mubr.f32.mxu0 %v1113_v52 }
 0x20d   :  { %822 = vmatmul.mubr.msk.f32.gmra.mrb[6].mxu0 %vm168_vm0, %v1250_v0 }
 0x20e   :  { %672 = vmatprep.mubr.f32.mxu0 %v1113_v52  ;;  %v682_v52 = vpop.f32.mrb[3].mxu1 }
 0x211   :  { %823 = vmatmul.mubr.msk.f32.gmra.mrb[8].mxu0 %vm168_vm0, %v1304_v27  ;;  %v686_v27 = vpop.f32.mrb[4].mxu1 }
 0x212   :  { %v688_v58 = vpop.f32.mrb[5].mxu1 }
 0x213   :  { %v1397_v60 = vpop.f32.mrb[6].mxu1 }
 0x214   :  { %v1400_v8 = vpop.f32.mrb[7].mxu1 }
 0x215   :  { %v698_v54 = vpop.f32.mrb[8].mxu1 }
 0x216   :  { %v700_v55 = vpop.f32.mrb[9].mxu1 }
 0x217   :  { %v704_v15 = vpop.f32.mrb[10].mxu1 }
 0x218   :  { %v706_v43 = vpop.f32.mrb[11].mxu1 }
 0x2cc   :  { %v546_v48 = vpop.f32.mrb[2].mxu0 }
 0x2cd   :  { %v547_v49 = vadd.f32 %v818_v36, %v546_v48  ;;  %v876_v50 = vpop.f32.mrb[3].mxu0 }
 0x2cf   :  { %v820_v1 = vmul.f32 -1.442695, %v547_v49 }
 0x2d1   :  { %933 = vpow2.f32 %v820_v1 }
 0x2db   :  { %v934_v41 = vpop.eup %933 }
 0x2dc   :  { %v553_v51 = vadd.f32 1.0, %v934_v41  ;;  %v662_v53 = vpop.f32.mrb[4].mxu0 }
 0x2dd   :  { %v664_v0 = vpop.f32.mrb[5].mxu0 }
 0x2de   :  { %935 = vrcp.f32 %v553_v51 }
 0x2e0   :  { %v668_v56 = vpop.f32.mrb[6].mxu0 }
 0x2e1   :  { %v670_v57 = vpop.f32.mrb[7].mxu0 }
 0x2e4   :  { %v674_v59 = vpop.f32.mrb[8].mxu0 }
 0x2e5   :  { %v676_v4 = vpop.f32.mrb[9].mxu0 }
 0x2e8   :  { %v936_v9 = vpop.eup %935 }
 0x2e9   :  { %v712_v14 = vrot.slane %v936_v9, %v711_v61  ;;  %v731_v63 = vrot.slane %v936_v9, %v730_v62 }
 0x2eb   :  { %718 = vbcast.lane.b32.xlu1 %v712_v14, 264  ;;  %714 = vbcast.lane.b32.xlu0 %v712_v14, 256 }
 0x2ef   :  { %722 = vbcast.lane.b32.xlu1 %v712_v14, 272  ;;  %733 = vbcast.lane.b32.xlu0 %v731_v63, 256 }
 0x2f3   :  { %726 = vbcast.lane.b32.xlu1 %v712_v14, 280  ;;  %741 = vbcast.lane.b32.xlu0 %v731_v63, 272 }
 0x2f7   :  { %737 = vbcast.lane.b32.xlu1 %v731_v63, 264 }
 0x2fb   :  { %745 = vbcast.lane.b32.xlu1 %v731_v63, 280 }
 0x35d   :  { %v719_v19 = vpop.permute.xlu1 %718  ;;  %v715_v20 = vpop.permute.xlu0 %714 }
 0x35e   :  { %v749_v25 = vmul.f32 %v719_v19, %v1274_v12  ;;  %v750_v29 = vmul.f32 %v719_v19, %v1276_v13  ;;  %v747_v35 = vmul.f32 %v715_v20, %v1262_v6  ;;  %v748_v3 = vmul.f32 %v715_v20, %v1264_v7 }
 0x360   :  { %v763_v38 = vadd.f32 %v747_v35, %v662_v53  ;;  %v764_v39 = vadd.f32 %v748_v3, %v664_v0  ;;  %v765_v40 = vadd.f32 %v749_v25, %v668_v56  ;;  %v766_v42 = vadd.f32 %v750_v29, %v670_v57 }
 0x361   :  { %v723_v44 = vpop.permute.xlu1 %722  ;;  %v734_v24 = vpop.permute.xlu0 %733 }
 0x362   :  { %779 = vst [vmem:[#allocation13] sm:$0xff] %v763_v38  ;;  %780 = vst [vmem:[#allocation13 + $0x8] sm:$0xff] %v764_v39  ;;  %v751_v37 = vmul.f32 %v723_v44, %v1294_v22  ;;  %v752_v12 = vmul.f32 %v723_v44, %v1296_v23  ;;  %v755_v13 = vmul.f32 %v734_v24, %v1254_v2 }
 0x363   :  { %781 = vst [vmem:[#allocation13 + $0x10] sm:$0xff] %v765_v40  ;;  %782 = vst [vmem:[#allocation13 + $0x18] sm:$0xff] %v766_v42  ;;  %v756_v6 = vmul.f32 %v734_v24, %v1260_v5 }
 0x364   :  { %v771_v30 = vadd.f32 %v755_v13, %v686_v27  ;;  %v767_v7 = vadd.f32 %v751_v37, %v674_v59  ;;  %v768_v45 = vadd.f32 %v752_v12, %v676_v4 }
 0x365   :  { %v772_v17 = vadd.f32 %v756_v6, %v688_v58  ;;  %v727_v46 = vpop.permute.xlu1 %726  ;;  %v742_v34 = vpop.permute.xlu0 %741 }
 0x366   :  { %787 = vst [vmem:[#allocation13 + $0x40] sm:$0xff] %v771_v30  ;;  %783 = vst [vmem:[#allocation13 + $0x20] sm:$0xff] %v767_v7  ;;  %v753_v16 = vmul.f32 %v727_v46, %v1314_v32  ;;  %v754_v22 = vmul.f32 %v727_v46, %v1316_v33  ;;  %v759_v23 = vmul.f32 %v742_v34, %v1286_v18 }
 0x367   :  { %788 = vst [vmem:[#allocation13 + $0x48] sm:$0xff] %v772_v17  ;;  %784 = vst [vmem:[#allocation13 + $0x28] sm:$0xff] %v768_v45  ;;  %v760_v2 = vmul.f32 %v742_v34, %v1292_v21 }
 0x368   :  { %v769_v5 = vadd.f32 %v753_v16, %v1392_v26  ;;  %v770_v47 = vadd.f32 %v754_v22, %v682_v52  ;;  %v775_v36 = vadd.f32 %v759_v23, %v698_v54 }
 0x369   :  { %v776_v48 = vadd.f32 %v760_v2, %v700_v55  ;;  %v738_v49 = vpop.permute.xlu1 %737 }
 0x36a   :  { %785 = vst [vmem:[#allocation13 + $0x30] sm:$0xff] %v769_v5  ;;  %786 = vst [vmem:[#allocation13 + $0x38] sm:$0xff] %v770_v47  ;;  %v757_v50 = vmul.f32 %v738_v49, %v1270_v10  ;;  %v758_v32 = vmul.f32 %v738_v49, %v1272_v11 }
 0x36b   :  { %791 = vst [vmem:[#allocation13 + $0x60] sm:$0xff] %v775_v36  ;;  %792 = vst [vmem:[#allocation13 + $0x68] sm:$0xff] %v776_v48 }
 0x36c   :  { %v773_v33 = vadd.f32 %v757_v50, %v1397_v60  ;;  %v774_v18 = vadd.f32 %v758_v32, %v1400_v8 }
 0x36d   :  { %v746_v1 = vpop.permute.xlu1 %745 }
 0x36e   :  { %789 = vst [vmem:[#allocation13 + $0x50] sm:$0xff] %v773_v33  ;;  %790 = vst [vmem:[#allocation13 + $0x58] sm:$0xff] %v774_v18  ;;  %v761_v21 = vmul.f32 %v746_v1, %v1306_v28  ;;  %v762_v26 = vmul.f32 %v746_v1, %v1312_v31 }
 0x370   :  { %v777_v41 = vadd.f32 %v761_v21, %v704_v15  ;;  %v778_v51 = vadd.f32 %v762_v26, %v706_v43 }
 0x372   :  { %793 = vst [vmem:[#allocation13 + $0x70] sm:$0xff] %v777_v41  ;;  %794 = vst [vmem:[#allocation13 + $0x78] sm:$0xff] %v778_v51 }
 0x373   :  { %1080 = shalt.err (!%p1077_p10)
}
 0x374   :  { %s1081_s18 = scalar_lea.hbm %s1445_s8, 2048 }
 0x375   :  { %p1082_p11 = scmp.ne.s32.totalorder %s1445_s8, %s1081_s18  ;;  %p1085_p12 = scmp.lt.u32.totalorder %s1081_s18, %s1445_s8 }
 0x377   :  { %p1087_p13 = pnand %p1085_p12, %p1082_p11 }
 0x379   :  { %1090 = shalt.err (!%p1087_p13)
}
 0x37a   :  { %806 = dma.vmem_to_hbm [thread:$0]  %s801_s12, 2048, %s1445_s8, [#allocation4], %s1106_s3, %s1106_s3, %s1107_s20  }
 0x37b   :  { %1099 = dma.done.wait [#allocation4], 2048  }
 0x37c   :  { %1100 = vsyncadd [#allocation4], 4294965248 }
 0x37d   :  { %810 = vsyncpa [#allocation3], 1 }
 0x37e   :  { %811 = vsyncpa [#allocation6], 1 }
 0x37f   :  { %812 = vsyncpa [#allocation9], 1 }
 0x380   :  { %813 = vsyncpa [#allocation12], 1 }
 0x381   :  { %814 = vsyncpa [#allocation4], 1 }

</bundles_post_ra>
